<compile_context>
chip_gen: v7x
topology: tpu7x:2x2x1
jax: 0.10.0
libtpu: 0.0.40
codegen_flags: <defaults>
</compile_context>

<pallas_src>
import jax
import jax.numpy as jnp
from jax.experimental import pallas as pl
from jax.experimental.pallas import tpu as pltpu


_LANE = 128        # lane width: K and output-feature dims padded to multiples of this
_MAX_TILE_N = 512  # rows per grid step (256-aligned for v6e/v7x MXU, VMEM-safe on v5e)


def _round_up(x, m):
    return (x + m - 1) // m * m


def _fused_predictor_kernel(x_ref, w_ref, b_ref, out_ref):
    """out = x @ w + b for one row tile; one fused MXU matmul covers both heads.

    x arrives in its native dtype and is cast to bf16 in-kernel (VPU) right before the MXU;
    accumulation stays f32, bias added in f32, store in the caller's dtype.
    """
    x_bf16 = x_ref[...].astype(jnp.bfloat16)
    acc = jnp.dot(x_bf16, w_ref[...], preferred_element_type=jnp.float32)
    out_ref[...] = (acc + b_ref[...]).astype(out_ref.dtype)


def prepare_fastrcnn_predictor_params(w_cls, b_cls, w_bbox, b_bbox):
    """One-time (model-load-time) parameter prep.

    w_cls  : [num_classes, C]   b_cls  : [num_classes]        (PyTorch nn.Linear layout)
    w_bbox : [num_classes*4, C] b_bbox : [num_classes*4]

    Returns:
      w_fused : [C_pad, OUT_pad]  bf16   (transposed, heads concatenated, zero-padded)
      b_fused : [1, OUT_pad]      f32
      meta    : (num_classes, num_bbox, in_channels)
    """
    num_classes, c = w_cls.shape
    num_bbox = w_bbox.shape[0]
    out_total = num_classes + num_bbox

    c_pad = _round_up(c, _LANE)
    out_pad = _round_up(out_total, _LANE)

    w_fused = jnp.concatenate([jnp.transpose(w_cls), jnp.transpose(w_bbox)], axis=1)
    w_fused = jnp.pad(w_fused, ((0, c_pad - c), (0, out_pad - out_total)))
    w_fused = w_fused.astype(jnp.bfloat16)

    b_fused = jnp.concatenate([b_cls, b_bbox], axis=0).astype(jnp.float32)
    b_fused = jnp.pad(b_fused, (0, out_pad - out_total)).reshape(1, out_pad)

    return w_fused, b_fused, (num_classes, num_bbox, c)


def fastrcnn_predictor(x, w_fused, b_fused, num_classes, num_bbox, in_channels):
    """Forward pass. x: [N, C, 1, 1] or [N, C]; params from prepare_fastrcnn_predictor_params."""
    if x.ndim == 4:
        assert x.shape[2] == 1 and x.shape[3] == 1, "spatial dims must be [1, 1]"
    x2d = x.reshape(x.shape[0], -1)                 # flatten(start_dim=1)
    n, c = x2d.shape
    assert c == in_channels

    c_pad, out_pad = w_fused.shape
    out_total = num_classes + num_bbox

    # Zero-pad ONLY along K, and only when C isn't already lane-aligned.  (Garbage in K would
    # corrupt the dot; garbage rows in the ragged last N tile only hit discarded output rows.)
    if c_pad != c:
        x2d = jnp.pad(x2d, ((0, 0), (0, c_pad - c)))

    # 128-aligned row tile; capped at _MAX_TILE_N and at ~N/2 so the single "parallel" grid
    # axis has >= 2 steps whenever N allows it (v7x dual-TensorCore sharding).
    tile_n = min(_MAX_TILE_N, _round_up(pl.cdiv(n, 2), _LANE))
    grid_n = pl.cdiv(n, tile_n)                     # ragged last tile is fine (rows discarded)

    fused_out = pl.pallas_call(
        _fused_predictor_kernel,
        out_shape=jax.ShapeDtypeStruct((n, out_pad), x2d.dtype),
        grid=(grid_n,),
        in_specs=[
            pl.BlockSpec((tile_n, c_pad), lambda i: (i, 0)),    # x row tile (pipelined)
            pl.BlockSpec((c_pad, out_pad), lambda i: (0, 0)),   # fused weights (resident)
            pl.BlockSpec((1, out_pad), lambda i: (0, 0)),       # fused bias (resident)
        ],
        out_specs=pl.BlockSpec((tile_n, out_pad), lambda i: (i, 0)),
        compiler_params=pltpu.CompilerParams(
            dimension_semantics=("parallel",),
            vmem_limit_bytes=32 * 1024 * 1024,      # headroom for 512-row tiles on v5e
        ),
    )(x2d, w_fused, b_fused)

    scores = fused_out[:, :num_classes]
    bbox_deltas = fused_out[:, num_classes:out_total]
    return scores, bbox_deltas


def _reference(x, w_cls, b_cls, w_bbox, b_bbox):
    x2d = x.reshape(x.shape[0], -1).astype(jnp.float32)
    return (x2d @ w_cls.T.astype(jnp.float32) + b_cls,
            x2d @ w_bbox.T.astype(jnp.float32) + b_bbox)


if __name__ == "__main__":
    key = jax.random.PRNGKey(0)
    k_x, k_wc, k_bc, k_wb, k_bb = jax.random.split(key, 5)

    batch = 8            # number of RoIs
    in_channels = 32     # box-head representation size (small synthetic)
    num_classes = 5      # including background

    # Input as produced by the box head: [N, C, 1, 1]
    x = jax.random.normal(k_x, (batch, in_channels, 1, 1), dtype=jnp.float32)

    # Deterministic synthetic parameters (PyTorch nn.Linear shapes).
    w_cls = jax.random.normal(k_wc, (num_classes, in_channels), jnp.float32) * 0.05
    b_cls = jax.random.normal(k_bc, (num_classes,), jnp.float32) * 0.01
    w_bbox = jax.random.normal(k_wb, (num_classes * 4, in_channels), jnp.float32) * 0.05
    b_bbox = jax.random.normal(k_bb, (num_classes * 4,), jnp.float32) * 0.01

    # One-time weight prep (hoisted out of the per-call forward path).
    w_fused, b_fused, (nc, nb, cin) = prepare_fastrcnn_predictor_params(
        w_cls, b_cls, w_bbox, b_bbox)

    fwd = jax.jit(fastrcnn_predictor, static_argnums=(3, 4, 5))
    scores, bbox_deltas = fwd(x, w_fused, b_fused, nc, nb, cin)
    jax.block_until_ready((scores, bbox_deltas))

    ref_scores, ref_bbox = _reference(x, w_cls, b_cls, w_bbox, b_bbox)
    assert scores.shape == (batch, num_classes)
    assert bbox_deltas.shape == (batch, num_classes * 4)
    # bf16 matmul inputs with f32 accumulation -> loosened tolerance vs f32 reference.
    assert jnp.allclose(scores, ref_scores, atol=2e-2, rtol=2e-2)
    assert jnp.allclose(bbox_deltas, ref_bbox, atol=2e-2, rtol=2e-2)

    print("KERNEL_OK")
</pallas_src>

<mosaic_0001>
module attributes {stable_mosaic.version = 11 : i64} {
  func.func @_fused_predictor_kernel(%arg0: i32, %arg1: memref<128x128xf32, #tpu.memory_space<vmem>>, %arg2: memref<128x128xbf16, #tpu.memory_space<vmem>>, %arg3: memref<1x128xf32, #tpu.memory_space<vmem>>, %arg4: memref<128x128xf32, #tpu.memory_space<vmem>>) attributes {dimension_semantics = [#tpu.dimension_semantics<parallel>], iteration_bounds = array<i64: 1>, scalar_prefetch = 0 : i64, scratch_operands = 0 : i64, tpu.core_type = #tpu.core_type<tc>, window_params = [{transform_indices = @transform_0, window_bounds = array<i64: 128, 128>}, {pipeline_mode = #tpu.pipeline_mode<synchronous>, transform_indices = @transform_1, window_bounds = array<i64: 128, 128>}, {pipeline_mode = #tpu.pipeline_mode<synchronous>, transform_indices = @transform_2, window_bounds = array<i64: 1, 128>}, {transform_indices = @transform_3, window_bounds = array<i64: 128, 128>}]} {
    %c0 = arith.constant 0 : index
    %c0_0 = arith.constant 0 : index
    %0 = vector.load %arg1[%c0, %c0_0] : memref<128x128xf32, #tpu.memory_space<vmem>>, vector<128x128xf32>
    %1 = arith.truncf %0 : vector<128x128xf32> to vector<128x128xbf16>
    %c0_1 = arith.constant 0 : index
    %c0_2 = arith.constant 0 : index
    %2 = vector.load %arg2[%c0_1, %c0_2] : memref<128x128xbf16, #tpu.memory_space<vmem>>, vector<128x128xbf16>
    %cst = arith.constant dense<0.000000e+00> : vector<128x128xf32>
    %3 = tpu.matmul %1, %2, %cst {dimension_numbers = #tpu.dot_dimension_numbers<[1], [0], [0], [1], [0, 0, 1, 1], [], []>} : vector<128x128xbf16>, vector<128x128xbf16>, vector<128x128xf32> -> vector<128x128xf32>
    %c0_3 = arith.constant 0 : index
    %c0_4 = arith.constant 0 : index
    %4 = vector.load %arg3[%c0_3, %c0_4] : memref<1x128xf32, #tpu.memory_space<vmem>>, vector<1x128xf32>
    %5 = vector.broadcast %4 : vector<1x128xf32> to vector<128x128xf32>
    %6 = arith.addf %3, %5 : vector<128x128xf32>
    %c0_5 = arith.constant 0 : index
    %c0_6 = arith.constant 0 : index
    %7 = vector.load %arg4[%c0_5, %c0_6] : memref<128x128xf32, #tpu.memory_space<vmem>>, vector<128x128xf32>
    tpu.vector_store %arg4[%c0_5, %c0_6], %6 {strides = array<i32>} : memref<128x128xf32, #tpu.memory_space<vmem>>, vector<128x128xf32>,
    return
  }
  func.func @transform_0(%arg0: i32) -> (i32, i32) {
    %c0_i32 = arith.constant 0 : i32
    %c0_i32_0 = arith.constant 0 : i32
    return %arg0, %c0_i32 : i32, i32
  }
  func.func @transform_1(%arg0: i32) -> (i32, i32) {
    %c0_i32 = arith.constant 0 : i32
    %c0_i32_0 = arith.constant 0 : i32
    %c0_i32_1 = arith.constant 0 : i32
    return %c0_i32, %c0_i32_0 : i32, i32
  }
  func.func @transform_2(%arg0: i32) -> (i32, i32) {
    %c0_i32 = arith.constant 0 : i32
    %c0_i32_0 = arith.constant 0 : i32
    %c0_i32_1 = arith.constant 0 : i32
    return %c0_i32, %c0_i32_0 : i32, i32
  }
  func.func @transform_3(%arg0: i32) -> (i32, i32) {
    %c0_i32 = arith.constant 0 : i32
    %c0_i32_0 = arith.constant 0 : i32
    return %arg0, %c0_i32 : i32, i32
  }
}

</mosaic_0001>

<bundles_post_ra>
// kernel: fastrcnn_predictor.1
= control target key start
LH: loop header
LB: loop body
LE: loop exit
PB: predicated region body
PF: predicated region fallthrough
CT: control target
= control target key end

     0   :  { %8 = vsyncpa [#allocation3], 0  ;;  %s386_s12 = smov [#allocation2]   ;;  %s475_s0 = inlined_call_operand.vmem [shape: f32[8,128], index: 0, kind: input, shape index: {}]   ;;  %s476_s1 = inlined_call_operand.hbm [shape: bf16[128,128], index: 1, kind: input, shape index: {}]   ;;  %s477_s2 = inlined_call_operand.vmem [shape: f32[1,128], index: 2, kind: input, shape index: {}]   ;;  %s478_s3 = inlined_call_operand.vmem [shape: f32[8,128], index: 3, kind: output, shape index: {}]  }
   0x1   :  { %s16_s13 = sshll.u32 %s386_s12, 4  ;;  %s362_s16 = scalar_lea.hbm %s476_s1, 1024  ;;  %s17_s13 = int_to_ptr.vmem [resolvable:$true] %s16_s13 }
   0x2   :  { %p363_p0 = scmp.ne.s32.totalorder %s476_s1, %s362_s16  ;;  %p366_p1 = scmp.lt.u32.totalorder %s362_s16, %s476_s1 }
   0x4   :  { %p368_p2 = pnand %p366_p1, %p363_p0 }
   0x6   :  { %371 = shalt.err (!%p368_p2)
}
   0x7   :  { %s372_s21 = scalar_lea.vmem %s17_s13, 1024  ;;  %p377_p4 = scmp.lt.s32.totalorder %s17_s13, %s17_s13 }
   0x8   :  { %p373_p3 = scmp.ne.s32.totalorder %s17_s13, %s372_s21  ;;  %p378_p5 = scmp.lt.s32.totalorder %s372_s21, %s372_s21 }
   0xa   :  { %p379_p6 = por %p378_p5, %p377_p4 }
   0xc   :  { %p380_p7 = pnand %p379_p6, %p373_p3 }
   0xe   :  { %383 = shalt.err (!%p380_p7)
}
   0xf   :  { %s387_s22 = smov 64   ;;  %s388_s23 = smov 4  }
  0x10   :  { %22 = dma.hbm_to_vmem [thread:$0]  %s476_s1, 1024, %s17_s13, [#allocation3], %s387_s22, %s387_s22, %s388_s23  }
  0x11   :  { %384 = dma.done.wait [#allocation3], 1024  }
  0x12   :  { %385 = vsyncadd [#allocation3], 4294966272  ;;  %v354_v0 = vld [vmem:[#allocation2] sm:$0xff]   ;;  %v355_v1 = vld [vmem:[#allocation2 + $0x8] sm:$0xff]  }
  0x13   :  { %303 = vmatprep.subr.bf16.mxu0 %v354_v0  ;;  %335 = vmatprep.subr.bf16.mxu1 %v354_v0  ;;  %v356_v2 = vld [vmem:[#allocation2 + $0x10] sm:$0xff]   ;;  %v357_v3 = vld [vmem:[#allocation2 + $0x18] sm:$0xff]   ;;  %v29_v4 = vld [vmem:[%s475_s0] sm:$0xff] }
  0x14   :  { %304 = vmatpush3.bf16.msra.mxu0 %v354_v0  ;;  %343 = vmatpush3.bf16.msra.mxu1 %v354_v0  ;;  %v30_v5 = vld [vmem:[%s475_s0 + $0x8] sm:$0xff]  ;;  %v37_v6 = vld [vmem:[%s475_s0 + $0x40] sm:$0xff]  ;;  %v360_v12 = vld [vmem:[#allocation2 + $0x30] sm:$0xff]  }
  0x15   :  { %305 = vmatprep.subr.bf16.mxu0 %v355_v1  ;;  %336 = vmatprep.subr.bf16.mxu1 %v355_v1  ;;  %v45_v7 = vpack.c.bf16 %v30_v5, %v29_v4  ;;  %v38_v8 = vld [vmem:[%s475_s0 + $0x48] sm:$0xff]  ;;  %v358_v10 = vld [vmem:[#allocation2 + $0x20] sm:$0xff]   ;;  %v361_v13 = vld [vmem:[#allocation2 + $0x38] sm:$0xff]  }
  0x16   :  { %v49_v9 = vpack.c.bf16 %v38_v8, %v37_v6  ;;  %v359_v11 = vld [vmem:[#allocation2 + $0x28] sm:$0xff]   ;;  %v31_v14 = vld [vmem:[%s475_s0 + $0x10] sm:$0xff]  ;;  %v32_v15 = vld [vmem:[%s475_s0 + $0x18] sm:$0xff] }
  0x17   :  { %319 = vmatprep.mubr.bf16.mxu0 %v45_v7  ;;  %v39_v16 = vld [vmem:[%s475_s0 + $0x50] sm:$0xff]  ;;  %v40_v17 = vld [vmem:[%s475_s0 + $0x58] sm:$0xff]  ;;  %v33_v18 = vld [vmem:[%s475_s0 + $0x20] sm:$0xff]  ;;  %v46_v22 = vpack.c.bf16 %v32_v15, %v31_v14 }
  0x18   :  { %306 = vmatpush3.bf16.msra.mxu0 %v355_v1  ;;  %344 = vmatpush3.bf16.msra.mxu1 %v355_v1  ;;  %v34_v19 = vld [vmem:[%s475_s0 + $0x28] sm:$0xff]  ;;  %v41_v20 = vld [vmem:[%s475_s0 + $0x60] sm:$0xff]  ;;  %v50_v23 = vpack.c.bf16 %v40_v17, %v39_v16  ;;  %v35_v26 = vld [vmem:[%s475_s0 + $0x30] sm:$0xff] }
  0x19   :  { %307 = vmatprep.subr.bf16.mxu0 %v356_v2  ;;  %337 = vmatprep.subr.bf16.mxu1 %v356_v2  ;;  %v42_v21 = vld [vmem:[%s475_s0 + $0x68] sm:$0xff]  ;;  %v47_v24 = vpack.c.bf16 %v34_v19, %v33_v18  ;;  %v36_v27 = vld [vmem:[%s475_s0 + $0x38] sm:$0xff]  ;;  %v43_v28 = vld [vmem:[%s475_s0 + $0x70] sm:$0xff] }
  0x1a   :  { %327 = vmatprep.mubr.bf16.mxu1 %v49_v9  ;;  %v51_v25 = vpack.c.bf16 %v42_v21, %v41_v20  ;;  %v44_v29 = vld [vmem:[%s475_s0 + $0x78] sm:$0xff]  ;;  %v48_v30 = vpack.c.bf16 %v36_v27, %v35_v26  ;;  %v278_v32 = vld [vmem:[%s477_s2] ss:$0 sm:$0xff] }
  0x1b   :  { %v52_v31 = vpack.c.bf16 %v44_v29, %v43_v28 }
  0x1c   :  { %308 = vmatpush3.bf16.msra.mxu0 %v356_v2  ;;  %345 = vmatpush3.bf16.msra.mxu1 %v356_v2 }
  0x1d   :  { %309 = vmatprep.subr.bf16.mxu0 %v357_v3  ;;  %338 = vmatprep.subr.bf16.mxu1 %v357_v3 }
  0x20   :  { %310 = vmatpush3.bf16.msra.mxu0 %v357_v3  ;;  %346 = vmatpush3.bf16.msra.mxu1 %v357_v3 }
  0x21   :  { %311 = vmatprep.subr.bf16.mxu0 %v358_v10  ;;  %339 = vmatprep.subr.bf16.mxu1 %v358_v10 }
  0x24   :  { %312 = vmatpush3.bf16.msra.mxu0 %v358_v10  ;;  %347 = vmatpush3.bf16.msra.mxu1 %v358_v10 }
  0x25   :  { %313 = vmatprep.subr.bf16.mxu0 %v359_v11  ;;  %340 = vmatprep.subr.bf16.mxu1 %v359_v11 }
  0x28   :  { %314 = vmatpush3.bf16.msra.mxu0 %v359_v11  ;;  %348 = vmatpush3.bf16.msra.mxu1 %v359_v11 }
  0x29   :  { %315 = vmatprep.subr.bf16.mxu0 %v360_v12  ;;  %341 = vmatprep.subr.bf16.mxu1 %v360_v12 }
  0x2c   :  { %316 = vmatpush3.bf16.msra.mxu0 %v360_v12  ;;  %349 = vmatpush3.bf16.msra.mxu1 %v360_v12 }
  0x2d   :  { %317 = vmatprep.subr.bf16.mxu0 %v361_v13  ;;  %342 = vmatprep.subr.bf16.mxu1 %v361_v13 }
  0x30   :  { %318 = vmatpush3.bf16.msra.mxu0 %v361_v13  ;;  %350 = vmatpush3.bf16.msra.mxu1 %v361_v13 }
  0x33   :  { %320 = vmatmul.mubr.bf16.vlgmr.msra.gmra.mrb[0].mxu0 %v46_v22  ;;  %328 = vmatmul.mubr.bf16.vlgmr.msra.gmra.mrb[0].mxu1 %v50_v23 }
  0x34   :  { %323 = vmatprep.mubr.bf16.mxu0 %v47_v24  ;;  %331 = vmatprep.mubr.bf16.mxu1 %v51_v25 }
  0x3b   :  { %324 = vmatmul.mubr.bf16.gmra.mrb[4].mxu0 %v48_v30  ;;  %332 = vmatmul.mubr.bf16.gmra.mrb[4].mxu1 %v52_v31 }
 0x106   :  { %v321_v33 = vpop.f32.mrb[0].mxu0  ;;  %v329_v34 = vpop.f32.mrb[0].mxu1 }
 0x107   :  { %v158_v35 = vpop.f32.mrb[1].mxu0  ;;  %v190_v36 = vpop.f32.mrb[1].mxu1 }
 0x108   :  { %v159_v37 = vadd.f32 %v278_v32, %v158_v35  ;;  %v322_v38 = vpop.f32.mrb[2].mxu0  ;;  %v330_v39 = vpop.f32.mrb[2].mxu1 }
 0x109   :  { %v161_v40 = vpop.f32.mrb[3].mxu0  ;;  %v193_v41 = vpop.f32.mrb[3].mxu1 }
 0x10a   :  { %267 = vst [vmem:[%s478_s3] sm:$0xff] %v159_v37 }
 0x10e   :  { %v325_v42 = vpop.f32.mrb[4].mxu0  ;;  %v333_v43 = vpop.f32.mrb[4].mxu1 }
 0x10f   :  { %v174_v44 = vpop.f32.mrb[5].mxu0  ;;  %v206_v45 = vpop.f32.mrb[5].mxu1 }
 0x110   :  { %v326_v46 = vpop.f32.mrb[6].mxu0  ;;  %v334_v47 = vpop.f32.mrb[6].mxu1 }
 0x111   :  { %v177_v48 = vpop.f32.mrb[7].mxu0  ;;  %v209_v49 = vpop.f32.mrb[7].mxu1 }
 0x112   :  { %273 = vsyncpa [#allocation3], 1 }

</bundles_post_ra>
